<compile_context>
chip_gen: v7x
topology: tpu7x:2x2x1
jax: 0.10.0
libtpu: 0.0.40
codegen_flags: <defaults>
</compile_context>

<pallas_src>
import jax
import jax.numpy as jnp
from jax.experimental import pallas as pl
from jax.experimental.pallas import tpu as pltpu


def _mlp_kernel(xT_ref, w1_ref, b1_ref, w2c_ref, b2_ref, o_ref):
    """Fused feature-major forward pass on one batch tile.

    xT:   (D, TB)   VMEM  batch tile, feature-major (batch on lanes)
    w1:   (H, D)    VMEM  PyTorch layout, used directly (no transpose needed)
    b1:   (H, 1)    VMEM  column bias, broadcasts along lanes
    w2c:  (H, 1)    VMEM  second-layer weights as a column
    b2:   (1, 1)    SMEM  scalar bias
    o:    (1, TB)   VMEM  lane-dense output tile
    """
    # linear1: (H, D) @ (D, TB) -> (H, TB)   single MXU push, no XLU relayout
    h = jnp.dot(w1_ref[...], xT_ref[...], preferred_element_type=jnp.float32)
    h = jnp.maximum(h + b1_ref[...], 0.0)                      # bias + ReLU (VPU)
    # linear2 (out_features == 1): VPU multiply + sublane reduce, scalar bias
    y = jnp.sum(h * w2c_ref[...], axis=0, keepdims=True) + b2_ref[0, 0]
    o_ref[...] = y.astype(o_ref.dtype)                         # full-width vst


def mlp_forward(x, params, *, tile_b=1024):
    """x: (B, D) f32; params = (w1 (H,D), b1_col (H,1), w2_col (H,1), b2 (1,1)).

    Returns (B, 1) to match the PyTorch module's output shape.
    """
    w1, b1_col, w2_col, b2 = params
    B, D = x.shape
    H = w1.shape[0]

    # Clamp the tile for tiny batches so we don't over-pad; tiles are always a
    # multiple of 128 lanes.
    tile_b = min(tile_b, pl.cdiv(B, 128) * 128)
    n_tiles = pl.cdiv(B, tile_b)
    b_pad = n_tiles * tile_b

    # Feature-major: batch goes onto the lane axis.  Pad batch to the tile.
    xT = x.T
    if b_pad != B:
        xT = jnp.pad(xT, ((0, 0), (0, b_pad - B)))

    yT = pl.pallas_call(
        _mlp_kernel,
        out_shape=jax.ShapeDtypeStruct((1, b_pad), jnp.float32),
        grid=(n_tiles,),
        in_specs=[
            pl.BlockSpec((D, tile_b), lambda i: (0, i)),          # x^T batch tile
            pl.BlockSpec((H, D), lambda i: (0, 0)),               # w1 (resident)
            pl.BlockSpec((H, 1), lambda i: (0, 0)),               # b1 (resident)
            pl.BlockSpec((H, 1), lambda i: (0, 0)),               # w2 col (resident)
            pl.BlockSpec(memory_space=pltpu.MemorySpace.SMEM),    # b2 scalar
        ],
        out_specs=pl.BlockSpec((1, tile_b), lambda i: (0, i)),
        compiler_params=pltpu.CompilerParams(
            dimension_semantics=("parallel",)),                   # v7x 2-TC sharding
    )(xT, w1, b1_col, w2_col, b2)

    # Drop batch padding and return the PyTorch-shaped (B, 1) column.
    return yT[:, :B].T


def init_params(key, input_dim, hidden=6):
    """torch.nn.Linear-style init (U(-1/sqrt(fan_in), +1/sqrt(fan_in))).

    Returns (kernel_params, torch_params): kernel_params are pre-laid-out for
    the feature-major kernel (done ONCE here, not per call); torch_params keep
    the PyTorch layout for the reference check.
    """
    k1, k2, k3, k4 = jax.random.split(key, 4)
    bound1 = 1.0 / jnp.sqrt(jnp.float32(input_dim))
    w1 = jax.random.uniform(k1, (hidden, input_dim), jnp.float32, -bound1, bound1)
    b1 = jax.random.uniform(k2, (hidden,), jnp.float32, -bound1, bound1)
    bound2 = 1.0 / jnp.sqrt(jnp.float32(hidden))
    w2 = jax.random.uniform(k3, (1, hidden), jnp.float32, -bound2, bound2)
    b2 = jax.random.uniform(k4, (1,), jnp.float32, -bound2, bound2)

    kernel_params = (w1, b1.reshape(hidden, 1), w2.T, b2.reshape(1, 1))
    torch_params = (w1, b1, w2, b2)
    return kernel_params, torch_params


if __name__ == "__main__":
    key = jax.random.PRNGKey(0)
    kx, kp = jax.random.split(key)

    input_dim = 13   # Boston housing feature count
    batch = 8        # small latency-scale example; kernel tiles scale to big B

    x = jax.random.normal(kx, (batch, input_dim), dtype=jnp.float32)
    kernel_params, (w1, b1, w2, b2) = init_params(kp, input_dim)

    y = mlp_forward(x, kernel_params)
    y = jax.block_until_ready(y)

    # Reference check in plain JAX (PyTorch semantics: x @ W.T + b)
    ref = jnp.maximum(x @ w1.T + b1, 0.0) @ w2.T + b2
    assert y.shape == (batch, 1)
    assert jnp.allclose(y, ref, atol=1e-5, rtol=1e-5)

    print("KERNEL_OK")
</pallas_src>

<mosaic_0001>
module attributes {stable_mosaic.version = 11 : i64} {
  func.func @_mlp_kernel(%arg0: i32, %arg1: memref<13x128xf32, #tpu.memory_space<vmem>>, %arg2: memref<6x13xf32, #tpu.memory_space<vmem>>, %arg3: memref<6x1xf32, #tpu.memory_space<vmem>>, %arg4: memref<6x1xf32, #tpu.memory_space<vmem>>, %arg5: memref<1x1xf32, #tpu.memory_space<smem>>, %arg6: memref<1x128xf32, #tpu.memory_space<vmem>>) attributes {dimension_semantics = [#tpu.dimension_semantics<parallel>], iteration_bounds = array<i64: 1>, scalar_prefetch = 0 : i64, scratch_operands = 0 : i64, tpu.core_type = #tpu.core_type<tc>, window_params = [{transform_indices = @transform_0, window_bounds = array<i64: 13, 128>}, {pipeline_mode = #tpu.pipeline_mode<synchronous>, transform_indices = @transform_1, window_bounds = array<i64: 6, 13>}, {pipeline_mode = #tpu.pipeline_mode<synchronous>, transform_indices = @transform_2, window_bounds = array<i64: 6, 1>}, {pipeline_mode = #tpu.pipeline_mode<synchronous>, transform_indices = @transform_3, window_bounds = array<i64: 6, 1>}, {transform_indices = @transform_4, window_bounds = array<i64: 1, 1>}, {transform_indices = @transform_5, window_bounds = array<i64: 1, 128>}]} {
    %c0 = arith.constant 0 : index
    %c0_0 = arith.constant 0 : index
    %0 = vector.load %arg2[%c0, %c0_0] : memref<6x13xf32, #tpu.memory_space<vmem>>, vector<6x13xf32>
    %c0_1 = arith.constant 0 : index
    %c0_2 = arith.constant 0 : index
    %1 = vector.load %arg1[%c0_1, %c0_2] : memref<13x128xf32, #tpu.memory_space<vmem>>, vector<13x128xf32>
    %cst = arith.constant dense<0.000000e+00> : vector<6x128xf32>
    %2 = tpu.matmul %0, %1, %cst {dimension_numbers = #tpu.dot_dimension_numbers<[1], [0], [0], [1], [0, 0, 1, 1], [], []>} : vector<6x13xf32>, vector<13x128xf32>, vector<6x128xf32> -> vector<6x128xf32>
    %c0_3 = arith.constant 0 : index
    %c0_4 = arith.constant 0 : index
    %3 = vector.load %arg3[%c0_3, %c0_4] : memref<6x1xf32, #tpu.memory_space<vmem>>, vector<6x1xf32>
    %4 = vector.broadcast %3 : vector<6x1xf32> to vector<6x128xf32>
    %5 = arith.addf %2, %4 : vector<6x128xf32>
    %cst_5 = arith.constant 0.000000e+00 : f32
    %6 = vector.broadcast %cst_5 : f32 to vector<6x128xf32>
    %7 = arith.maximumf %5, %6 : vector<6x128xf32>
    %c0_6 = arith.constant 0 : index
    %c0_7 = arith.constant 0 : index
    %8 = vector.load %arg4[%c0_6, %c0_7] : memref<6x1xf32, #tpu.memory_space<vmem>>, vector<6x1xf32>
    %9 = vector.broadcast %8 : vector<6x1xf32> to vector<6x128xf32>
    %10 = arith.mulf %7, %9 : vector<6x128xf32>
    %cst_8 = arith.constant dense<0.000000e+00> : vector<128xf32>
    %11 = vector.multi_reduction <add>, %10, %cst_8 [0] : vector<6x128xf32> to vector<128xf32>
    %12 = vector.shape_cast %11 : vector<128xf32> to vector<1x128xf32>
    %c0_9 = arith.constant 0 : index
    %c0_10 = arith.constant 0 : index
    %13 = memref.load %arg5[%c0_9, %c0_10] : memref<1x1xf32, #tpu.memory_space<smem>>
    %14 = vector.broadcast %13 : f32 to vector<1x128xf32>
    %15 = arith.addf %12, %14 : vector<1x128xf32>
    %c0_11 = arith.constant 0 : index
    %c0_12 = arith.constant 0 : index
    %16 = vector.load %arg6[%c0_11, %c0_12] : memref<1x128xf32, #tpu.memory_space<vmem>>, vector<1x128xf32>
    tpu.vector_store %arg6[%c0_11, %c0_12], %15 {strides = array<i32>} : memref<1x128xf32, #tpu.memory_space<vmem>>, vector<1x128xf32>,
    return
  }
  func.func @transform_0(%arg0: i32) -> (i32, i32) {
    %c0_i32 = arith.constant 0 : i32
    %c0_i32_0 = arith.constant 0 : i32
    return %c0_i32, %arg0 : i32, i32
  }
  func.func @transform_1(%arg0: i32) -> (i32, i32) {
    %c0_i32 = arith.constant 0 : i32
    %c0_i32_0 = arith.constant 0 : i32
    %c0_i32_1 = arith.constant 0 : i32
    return %c0_i32, %c0_i32_0 : i32, i32
  }
  func.func @transform_2(%arg0: i32) -> (i32, i32) {
    %c0_i32 = arith.constant 0 : i32
    %c0_i32_0 = arith.constant 0 : i32
    %c0_i32_1 = arith.constant 0 : i32
    return %c0_i32, %c0_i32_0 : i32, i32
  }
  func.func @transform_3(%arg0: i32) -> (i32, i32) {
    %c0_i32 = arith.constant 0 : i32
    %c0_i32_0 = arith.constant 0 : i32
    %c0_i32_1 = arith.constant 0 : i32
    return %c0_i32, %c0_i32_0 : i32, i32
  }
  func.func @transform_4(%arg0: i32) -> (i32, i32) {
    %c0_i32 = arith.constant 0 : i32
    %c0_i32_0 = arith.constant 0 : i32
    %c0_i32_1 = arith.constant 0 : i32
    return %c0_i32, %c0_i32_0 : i32, i32
  }
  func.func @transform_5(%arg0: i32) -> (i32, i32) {
    %c0_i32 = arith.constant 0 : i32
    %c0_i32_0 = arith.constant 0 : i32
    return %c0_i32, %arg0 : i32, i32
  }
}

</mosaic_0001>

<bundles_post_ra>
// kernel: tpu_custom_call.1
= control target key start
LH: loop header
LB: loop body
LE: loop exit
PB: predicated region body
PF: predicated region fallthrough
CT: control target
= control target key end

     0   :  { %vm35_vm0 = vcmask 1044480   ;;  %v190_v2 = vmov 0.0|0.0   ;;  %vm191_vm1 = vmmov 1   ;;  %vm192_vm3 = vmmov 0   ;;  %s256_s0 = inlined_call_operand.vmem [shape: f32[13,128], index: 0, kind: input, shape index: {}]   ;;  %s257_s1 = inlined_call_operand.vmem [shape: f32[6,13], index: 1, kind: input, shape index: {}]   ;;  %s258_s2 = inlined_call_operand.vmem [shape: f32[6,1], index: 2, kind: input, shape index: {}]   ;;  %s259_s3 = inlined_call_operand.vmem [shape: f32[6,1], index: 3, kind: input, shape index: {}]   ;;  %s260_s4 = inlined_call_operand.<no memory space> [shape: f32[1,1], index: 4, kind: input, shape index: {}]   ;;  %s261_s5 = inlined_call_operand.hbm [shape: f32[1,128], index: 5, kind: output, shape index: {}]  }
   0x1   :  { %v23_v0 = vld [vmem:[%s256_s0] sm:$0xff]  ;;  %v24_v1 = vld [vmem:[%s256_s0 + $0x8] sm:$0x1f]  ;;  %155 = vmatprep.subr.bf16.mxu0 %v190_v2  ;;  %vm157_vm2 = vmpackc.low %vm35_vm0, %vm191_vm1  ;;  %v193_v4 = vmov 0.0   ;;  %vm31_vm4 = vcmask 105472   ;;  %v194_v7 = vmov 0  }
   0x2   :  { %v156_v3 = vpack.c.bf16 %v24_v1, %v23_v0  ;;  %152 = vmatprep.mubr.msk.f32.mxu0 %vm192_vm3, %v193_v4  ;;  %v25_v5 = vld [vmem:[%s258_s2] sm:$0x3f]  ;;  %165 = vset.pattern.permute.xlu0 %v194_v7 }
   0x3   :  { %v22_v6 = vld [vmem:[%s257_s1] sm:$0x3f] }
   0x4   :  { %158 = vmatpush3.bf16.msk.msra.mxu0 %vm157_vm2, %v156_v3 }
   0x5   :  { %11 = vsyncpa [#allocation4], 0  ;;  %28 = vperm.xlu0 %165, %v25_v5   ;;  %v110_v8 = vld [vmem:[%s259_s3] sm:$0x3f]  ;;  %vm117_vm5 = vcmask 1045504   ;;  %v126_v22 = vstv %s260_s4  ;;  %s195_s3 = smov [#allocation3]  }
   0x6   :  { %s135_s27 = sshll.u32 %s195_s3, 4  ;;  %s136_s27 = int_to_ptr.vmem [resolvable:$true] %s135_s27 }
   0x7   :  { %153 = vmatmul.mubr.msk.f32.vlgmr.msra.gmra.mrb[0].mxu0 %vm31_vm4, %v22_v6  ;;  %s166_s28 = scalar_lea.vmem %s136_s27, 16  ;;  %s170_s29 = scalar_lea.vmem %s136_s27, 32 }
   0x8   :  { %p167_p0 = scmp.ne.s32.totalorder %s136_s27, %s166_s28  ;;  %p171_p1 = scmp.lt.s32.totalorder %s136_s27, %s136_s27 }
   0x9   :  { %113 = vperm.xlu0 %165, %v110_v8   ;;  %p172_p2 = scmp.lt.s32.totalorder %s170_s29, %s166_s28 }
   0xb   :  { %p173_p3 = por %p172_p2, %p171_p1 }
   0xd   :  { %p174_p4 = pnand %p173_p3, %p167_p0 }
  0x84   :  { %v29_v9 = vpop.permute.xlu0 %28 }
  0x88   :  { %v114_v14 = vpop.permute.xlu0 %113 }
  0xda   :  { %v105_v10 = vpop.f32.mrb[0].mxu0 }
  0xdb   :  { %v106_v11 = vadd.f32 %v105_v10, %v29_v9  ;;  %v154_v12 = vpop.f32.mrb[1].mxu0 }
  0xdd   :  { %v109_v13 = vmax.f32 %v106_v11, 0.0 }
  0xdf   :  { %v116_v15 = vmul.f32 %v114_v14, %v109_v13 }
  0xe1   :  { %v118_v16 = vsel %vm117_vm5, %v116_v15, 0.0 }
  0xe2   :  { %v119_v17 = vrot.slane %v118_v16, 4 }
  0xe4   :  { %v120_v18 = vadd.f32 %v119_v17, %v118_v16 }
  0xe6   :  { %v121_v19 = vrot.slane %v120_v18, 2 }
  0xe8   :  { %v122_v20 = vadd.f32 %v121_v19, %v120_v18 }
  0xea   :  { %v123_v21 = vrot.slane %v122_v20, 1 }
  0xec   :  { %v124_v23 = vadd.f32 %v123_v21, %v122_v20 }
  0xee   :  { %v127_v24 = vadd.f32 %v126_v22, %v124_v23 }
  0xf0   :  { %128 = vst [vmem:[#allocation3] sm:$0x1] %v127_v24 }
  0xf1   :  { %177 = shalt.err (!%p174_p4)
}
  0xf2   :  { %s178_s7 = scalar_lea.hbm %s261_s5, 16 }
  0xf3   :  { %p179_p5 = scmp.ne.s32.totalorder %s261_s5, %s178_s7  ;;  %p182_p6 = scmp.lt.u32.totalorder %s178_s7, %s261_s5 }
  0xf5   :  { %p184_p7 = pnand %p182_p6, %p179_p5 }
  0xf7   :  { %187 = shalt.err (!%p184_p7)
}
  0xf8   :  { %138 = dma.vmem_to_hbm [thread:$0]  %s136_s27, 16, %s261_s5, [#allocation4]  }
  0xf9   :  { %188 = dma.done.wait [#allocation4], 16  }
  0xfa   :  { %189 = vsyncadd [#allocation4], 4294967280 }
  0xfb   :  { %142 = vsyncpa [#allocation4], 1 }

</bundles_post_ra>
